<compile_context>
chip_gen: v7x
topology: tpu7x:2x2x1
jax: 0.10.0
libtpu: 0.0.40
codegen_flags: <defaults>
</compile_context>

<pallas_src>
import jax
import jax.numpy as jnp
from jax import lax
from jax.experimental import pallas as pl
from jax.experimental.pallas import tpu as pltpu

_INV_SQRT2 = 0.7071067811865475
_LN_EPS = 1e-5


# ----------------------------- Pallas kernel -------------------------------

def _flava_head_kernel(x_ref, wf_ref, w1_ref, b1_ref, w2_ref, b2_ref, out_ref):
    """Fused: (stub) multimodal fusion -> Linear -> GELU -> LayerNorm -> Linear."""
    # --- synthetic encoder stub: single fused matmul (bias lives in the ones column)
    mm_feat = jnp.tanh(jnp.dot(x_ref[...], wf_ref[...],
                               preferred_element_type=jnp.float32))   # (TB, D)

    # --- logits_proj[0]: Linear(D, 2D)
    h = jnp.dot(mm_feat, w1_ref[...], preferred_element_type=jnp.float32) + b1_ref[...]

    # --- GELU (exact / erf form, matches torch.nn.GELU default)
    h = 0.5 * h * (1.0 + lax.erf(h * _INV_SQRT2))

    # --- LayerNorm(2D), eps=1e-5, biased variance; affine folded into w2/b2
    mean = jnp.mean(h, axis=-1, keepdims=True)
    centered = h - mean
    var = jnp.mean(centered * centered, axis=-1, keepdims=True)
    ln = centered * lax.rsqrt(var + _LN_EPS)

    # --- logits_proj[3]: Linear(2D, num_labels) onto a lane-dense padded output
    out_ref[...] = (jnp.dot(ln, w2_ref[...], preferred_element_type=jnp.float32)
                    + b2_ref[...]).astype(out_ref.dtype)


# ------------------------------- wrapper ------------------------------------

def _ceil_to(x, m):
    return ((x + m - 1) // m) * m


def flava_multimodal_classifier(image, text_emb_pooled, params):
    """image: (B, C, H, W) f32 NCHW; text_emb_pooled: (B, D_txt) f32."""
    (wimg, bimg, wtxt, btxt, w1, b1, gamma, beta, w2, b2) = params

    B = image.shape[0]
    img_flat = image.reshape(B, -1).astype(jnp.float32)
    txt = text_emb_pooled.astype(jnp.float32)
    d_img = img_flat.shape[1]
    d_txt = txt.shape[1]
    embed_dim = w1.shape[0]
    hidden = w1.shape[1]
    num_labels = w2.shape[1]

    # ---- fuse image/text matmuls into one; bias folded into a "ones" column ----
    k_raw = d_img + d_txt
    k_pad = _ceil_to(k_raw + 1, 128)                 # +1 column carries fused bias
    tile_b = 128 if B >= 128 else 8                  # f32 sublane height when tiny
    b_pad = _ceil_to(B, tile_b)

    x = jnp.zeros((b_pad, k_pad), jnp.float32)
    x = x.at[:B, :d_img].set(img_flat)
    x = x.at[:B, d_img:k_raw].set(txt)
    x = x.at[:B, k_raw].set(1.0)                     # bias column

    w_fused = jnp.zeros((k_pad, embed_dim), jnp.float32)
    w_fused = w_fused.at[:d_img].set(wimg)
    w_fused = w_fused.at[d_img:k_raw].set(wtxt)
    w_fused = w_fused.at[k_raw].set((bimg + btxt).reshape(-1))

    # ---- fold LayerNorm affine into the final projection (exact algebra) ----
    w2_fold = w2 * gamma.reshape(-1, 1)              # row-scale by gamma
    b2_fold = beta @ w2 + b2                         # (1, num_labels)

    # ---- lane-dense output: pad num_labels up to a multiple of 128 ----
    n_pad = _ceil_to(num_labels, 128)
    w2p = jnp.zeros((hidden, n_pad), jnp.float32).at[:, :num_labels].set(w2_fold)
    b2p = jnp.zeros((1, n_pad), jnp.float32).at[:, :num_labels].set(b2_fold)

    grid = (b_pad // tile_b,)
    const = lambda i: (0, 0)                         # weights stay resident

    out = pl.pallas_call(
        _flava_head_kernel,
        out_shape=jax.ShapeDtypeStruct((b_pad, n_pad), jnp.float32),
        grid=grid,
        in_specs=[
            pl.BlockSpec((tile_b, k_pad), lambda i: (i, 0)),   # x: batch tiled
            pl.BlockSpec((k_pad, embed_dim), const),           # fused weight
            pl.BlockSpec((embed_dim, hidden), const),          # w1
            pl.BlockSpec((1, hidden), const),                  # b1
            pl.BlockSpec((hidden, n_pad), const),              # w2 (LN folded, padded)
            pl.BlockSpec((1, n_pad), const),                   # b2 (LN folded, padded)
        ],
        out_specs=pl.BlockSpec((tile_b, n_pad), lambda i: (i, 0)),
        compiler_params=pltpu.CompilerParams(
            dimension_semantics=("parallel",)),                # v7x: split batch on 2 TCs
    )(x, w_fused, w1, b1, w2p, b2p)

    return out[:B, :num_labels]


# --------------------------- parameter creation -----------------------------

def make_params(key, img_dim, d_txt, embed_dim, num_labels):
    ks = jax.random.split(key, 8)
    scale = 0.02
    wimg = scale * jax.random.normal(ks[0], (img_dim, embed_dim), jnp.float32)
    bimg = jnp.zeros((1, embed_dim), jnp.float32)
    wtxt = scale * jax.random.normal(ks[1], (d_txt, embed_dim), jnp.float32)
    btxt = jnp.zeros((1, embed_dim), jnp.float32)
    # logits_proj params
    w1 = scale * jax.random.normal(ks[2], (embed_dim, 2 * embed_dim), jnp.float32)
    b1 = 0.01 * jax.random.normal(ks[3], (1, 2 * embed_dim), jnp.float32)
    gamma = 1.0 + 0.1 * jax.random.normal(ks[6], (1, 2 * embed_dim), jnp.float32)
    beta = 0.01 * jax.random.normal(ks[7], (1, 2 * embed_dim), jnp.float32)
    w2 = scale * jax.random.normal(ks[4], (2 * embed_dim, num_labels), jnp.float32)
    b2 = 0.01 * jax.random.normal(ks[5], (1, num_labels), jnp.float32)
    return (wimg, bimg, wtxt, btxt, w1, b1, gamma, beta, w2, b2)


# --------------------------------- main --------------------------------------

if __name__ == "__main__":
    # Small shapes consistent with the module's forward.
    B, C, H, W = 2, 4, 16, 16          # image, NCHW
    S, VOCAB, D_TXT = 8, 101, 32       # text token ids + embedding
    EMBED_DIM = 32                     # FLAVA multimodal embed_dim (small)
    NUM_LABELS = 3

    key = jax.random.PRNGKey(0)
    k_img, k_txt, k_emb, k_par = jax.random.split(key, 4)

    image = jax.random.normal(k_img, (B, C, H, W), jnp.float32)
    text_ids = jax.random.randint(k_txt, (B, S), 0, VOCAB, jnp.int32)

    # Glue: token embedding lookup + mean pool (gather stays in plain JAX).
    tok_emb_table = 0.02 * jax.random.normal(k_emb, (VOCAB, D_TXT), jnp.float32)
    text_emb_pooled = jnp.take(tok_emb_table, text_ids, axis=0).mean(axis=1)  # (B, D_TXT)

    params = make_params(k_par, C * H * W, D_TXT, EMBED_DIM, NUM_LABELS)

    logits = flava_multimodal_classifier(image, text_emb_pooled, params)
    jax.block_until_ready(logits)

    # Pure-JAX reference (un-fused, un-folded) for a sanity check.
    def ref(img, txt, params):
        (wimg, bimg, wtxt, btxt, w1, b1, gamma, beta, w2, b2) = params
        f = jnp.tanh(img.reshape(img.shape[0], -1) @ wimg + bimg + txt @ wtxt + btxt)
        h = f @ w1 + b1
        h = 0.5 * h * (1.0 + lax.erf(h / jnp.sqrt(2.0)))
        mean = h.mean(-1, keepdims=True)
        var = ((h - mean) ** 2).mean(-1, keepdims=True)
        ln = (h - mean) * lax.rsqrt(var + 1e-5) * gamma + beta
        return ln @ w2 + b2

    expected = ref(image, text_emb_pooled, params)
    assert logits.shape == (B, NUM_LABELS)
    assert jnp.allclose(logits, expected, atol=1e-4, rtol=1e-4)

    print("KERNEL_OK")
</pallas_src>

<mosaic_0001>
module attributes {stable_mosaic.version = 11 : i64} {
  func.func @_flava_head_kernel(%arg0: i32, %arg1: memref<8x1152xf32, #tpu.memory_space<vmem>>, %arg2: memref<1152x32xf32, #tpu.memory_space<vmem>>, %arg3: memref<32x64xf32, #tpu.memory_space<vmem>>, %arg4: memref<1x64xf32, #tpu.memory_space<vmem>>, %arg5: memref<64x128xf32, #tpu.memory_space<vmem>>, %arg6: memref<1x128xf32, #tpu.memory_space<vmem>>, %arg7: memref<8x128xf32, #tpu.memory_space<vmem>>) attributes {dimension_semantics = [#tpu.dimension_semantics<parallel>], iteration_bounds = array<i64: 1>, scalar_prefetch = 0 : i64, scratch_operands = 0 : i64, tpu.core_type = #tpu.core_type<tc>, window_params = [{transform_indices = @transform_0, window_bounds = array<i64: 8, 1152>}, {pipeline_mode = #tpu.pipeline_mode<synchronous>, transform_indices = @transform_1, window_bounds = array<i64: 1152, 32>}, {pipeline_mode = #tpu.pipeline_mode<synchronous>, transform_indices = @transform_2, window_bounds = array<i64: 32, 64>}, {pipeline_mode = #tpu.pipeline_mode<synchronous>, transform_indices = @transform_3, window_bounds = array<i64: 1, 64>}, {pipeline_mode = #tpu.pipeline_mode<synchronous>, transform_indices = @transform_4, window_bounds = array<i64: 64, 128>}, {pipeline_mode = #tpu.pipeline_mode<synchronous>, transform_indices = @transform_5, window_bounds = array<i64: 1, 128>}, {transform_indices = @transform_6, window_bounds = array<i64: 8, 128>}]} {
    %c0 = arith.constant 0 : index
    %c0_0 = arith.constant 0 : index
    %0 = vector.load %arg1[%c0, %c0_0] : memref<8x1152xf32, #tpu.memory_space<vmem>>, vector<8x1152xf32>
    %c0_1 = arith.constant 0 : index
    %c0_2 = arith.constant 0 : index
    %1 = vector.load %arg2[%c0_1, %c0_2] : memref<1152x32xf32, #tpu.memory_space<vmem>>, vector<1152x32xf32>
    %cst = arith.constant dense<0.000000e+00> : vector<8x32xf32>
    %2 = tpu.matmul %0, %1, %cst {dimension_numbers = #tpu.dot_dimension_numbers<[1], [0], [0], [1], [0, 0, 1, 1], [], []>} : vector<8x1152xf32>, vector<1152x32xf32>, vector<8x32xf32> -> vector<8x32xf32>
    %3 = math.tanh %2 : vector<8x32xf32>
    %c0_3 = arith.constant 0 : index
    %c0_4 = arith.constant 0 : index
    %4 = vector.load %arg3[%c0_3, %c0_4] : memref<32x64xf32, #tpu.memory_space<vmem>>, vector<32x64xf32>
    %cst_5 = arith.constant dense<0.000000e+00> : vector<8x64xf32>
    %5 = tpu.matmul %3, %4, %cst_5 {dimension_numbers = #tpu.dot_dimension_numbers<[1], [0], [0], [1], [0, 0, 1, 1], [], []>} : vector<8x32xf32>, vector<32x64xf32>, vector<8x64xf32> -> vector<8x64xf32>
    %c0_6 = arith.constant 0 : index
    %c0_7 = arith.constant 0 : index
    %6 = vector.load %arg4[%c0_6, %c0_7] : memref<1x64xf32, #tpu.memory_space<vmem>>, vector<1x64xf32>
    %7 = vector.broadcast %6 : vector<1x64xf32> to vector<8x64xf32>
    %8 = arith.addf %5, %7 : vector<8x64xf32>
    %cst_8 = arith.constant 5.000000e-01 : f32
    %9 = vector.broadcast %cst_8 : f32 to vector<8x64xf32>
    %10 = arith.mulf %9, %8 : vector<8x64xf32>
    %cst_9 = arith.constant 0.707106769 : f32
    %11 = vector.broadcast %cst_9 : f32 to vector<8x64xf32>
    %12 = arith.mulf %8, %11 : vector<8x64xf32>
    %13 = math.erf %12 : vector<8x64xf32>
    %cst_10 = arith.constant 1.000000e+00 : f32
    %14 = vector.broadcast %cst_10 : f32 to vector<8x64xf32>
    %15 = arith.addf %14, %13 : vector<8x64xf32>
    %16 = arith.mulf %10, %15 : vector<8x64xf32>
    %cst_11 = arith.constant dense<0.000000e+00> : vector<8xf32>
    %17 = vector.multi_reduction <add>, %16, %cst_11 [1] : vector<8x64xf32> to vector<8xf32>
    %18 = vector.shape_cast %17 : vector<8xf32> to vector<8x1xf32>
    %cst_12 = arith.constant 6.400000e+01 : f32
    %19 = vector.broadcast %cst_12 : f32 to vector<8x1xf32>
    %20 = arith.divf %18, %19 : vector<8x1xf32>
    %21 = vector.broadcast %20 : vector<8x1xf32> to vector<8x64xf32>
    %22 = arith.subf %16, %21 : vector<8x64xf32>
    %23 = arith.mulf %22, %22 : vector<8x64xf32>
    %cst_13 = arith.constant dense<0.000000e+00> : vector<8xf32>
    %24 = vector.multi_reduction <add>, %23, %cst_13 [1] : vector<8x64xf32> to vector<8xf32>
    %25 = vector.shape_cast %24 : vector<8xf32> to vector<8x1xf32>
    %cst_14 = arith.constant 6.400000e+01 : f32
    %26 = vector.broadcast %cst_14 : f32 to vector<8x1xf32>
    %27 = arith.divf %25, %26 : vector<8x1xf32>
    %cst_15 = arith.constant 9.99999974E-6 : f32
    %28 = vector.broadcast %cst_15 : f32 to vector<8x1xf32>
    %29 = arith.addf %27, %28 : vector<8x1xf32>
    %30 = math.rsqrt %29 : vector<8x1xf32>
    %31 = vector.broadcast %30 : vector<8x1xf32> to vector<8x64xf32>
    %32 = arith.mulf %22, %31 : vector<8x64xf32>
    %c0_16 = arith.constant 0 : index
    %c0_17 = arith.constant 0 : index
    %33 = vector.load %arg5[%c0_16, %c0_17] : memref<64x128xf32, #tpu.memory_space<vmem>>, vector<64x128xf32>
    %cst_18 = arith.constant dense<0.000000e+00> : vector<8x128xf32>
    %34 = tpu.matmul %32, %33, %cst_18 {dimension_numbers = #tpu.dot_dimension_numbers<[1], [0], [0], [1], [0, 0, 1, 1], [], []>} : vector<8x64xf32>, vector<64x128xf32>, vector<8x128xf32> -> vector<8x128xf32>
    %c0_19 = arith.constant 0 : index
    %c0_20 = arith.constant 0 : index
    %35 = vector.load %arg6[%c0_19, %c0_20] : memref<1x128xf32, #tpu.memory_space<vmem>>, vector<1x128xf32>
    %36 = vector.broadcast %35 : vector<1x128xf32> to vector<8x128xf32>
    %37 = arith.addf %34, %36 : vector<8x128xf32>
    %c0_21 = arith.constant 0 : index
    %c0_22 = arith.constant 0 : index
    %38 = vector.load %arg7[%c0_21, %c0_22] : memref<8x128xf32, #tpu.memory_space<vmem>>, vector<8x128xf32>
    tpu.vector_store %arg7[%c0_21, %c0_22], %37 {strides = array<i32>} : memref<8x128xf32, #tpu.memory_space<vmem>>, vector<8x128xf32>,
    return
  }
  func.func @transform_0(%arg0: i32) -> (i32, i32) {
    %c0_i32 = arith.constant 0 : i32
    %c0_i32_0 = arith.constant 0 : i32
    return %arg0, %c0_i32 : i32, i32
  }
  func.func @transform_1(%arg0: i32) -> (i32, i32) {
    %c0_i32 = arith.constant 0 : i32
    %c0_i32_0 = arith.constant 0 : i32
    %c0_i32_1 = arith.constant 0 : i32
    return %c0_i32, %c0_i32_0 : i32, i32
  }
  func.func @transform_2(%arg0: i32) -> (i32, i32) {
    %c0_i32 = arith.constant 0 : i32
    %c0_i32_0 = arith.constant 0 : i32
    %c0_i32_1 = arith.constant 0 : i32
    return %c0_i32, %c0_i32_0 : i32, i32
  }
  func.func @transform_3(%arg0: i32) -> (i32, i32) {
    %c0_i32 = arith.constant 0 : i32
    %c0_i32_0 = arith.constant 0 : i32
    %c0_i32_1 = arith.constant 0 : i32
    return %c0_i32, %c0_i32_0 : i32, i32
  }
  func.func @transform_4(%arg0: i32) -> (i32, i32) {
    %c0_i32 = arith.constant 0 : i32
    %c0_i32_0 = arith.constant 0 : i32
    %c0_i32_1 = arith.constant 0 : i32
    return %c0_i32, %c0_i32_0 : i32, i32
  }
  func.func @transform_5(%arg0: i32) -> (i32, i32) {
    %c0_i32 = arith.constant 0 : i32
    %c0_i32_0 = arith.constant 0 : i32
    %c0_i32_1 = arith.constant 0 : i32
    return %c0_i32, %c0_i32_0 : i32, i32
  }
  func.func @transform_6(%arg0: i32) -> (i32, i32) {
    %c0_i32 = arith.constant 0 : i32
    %c0_i32_0 = arith.constant 0 : i32
    return %arg0, %c0_i32 : i32, i32
  }
}

</mosaic_0001>

<bundles_post_ra>
// kernel: tpu_custom_call.1
= control target key start
LH: loop header
LB: loop body
LE: loop exit
PB: predicated region body
PF: predicated region fallthrough
CT: control target
= control target key end

     0   :  { %s1755_s0 = inlined_call_operand.vmem [shape: f32[8,1152], index: 0, kind: input, shape index: {}]   ;;  %s1756_s1 = inlined_call_operand.vmem [shape: f32[1152,32], index: 1, kind: input, shape index: {}]   ;;  %s1757_s2 = inlined_call_operand.vmem [shape: f32[32,64], index: 2, kind: input, shape index: {}]   ;;  %s1758_s3 = inlined_call_operand.vmem [shape: f32[1,64], index: 3, kind: input, shape index: {}]   ;;  %s1759_s4 = inlined_call_operand.vmem [shape: f32[64,128], index: 4, kind: input, shape index: {}]   ;;  %s1760_s5 = inlined_call_operand.vmem [shape: f32[1,128], index: 5, kind: input, shape index: {}]   ;;  %s1761_s6 = inlined_call_operand.hbm [shape: f32[8,128], index: 6, kind: output, shape index: {}]  }
   0x1   :  { %v49_v0 = vld [vmem:[%s1756_s1 + $0x80] sm:$0xff]  ;;  %v50_v1 = vld [vmem:[%s1756_s1 + $0x88] sm:$0xff]  ;;  %v51_v11 = vld [vmem:[%s1756_s1 + $0x90] sm:$0xff] }
   0x2   :  { %v81_v2 = vld [vmem:[%s1756_s1 + $0x180] sm:$0xff]  ;;  %v976_v3 = vpack.c.bf16 %v50_v1, %v49_v0  ;;  %v82_v4 = vld [vmem:[%s1756_s1 + $0x188] sm:$0xff]  ;;  %v52_v13 = vld [vmem:[%s1756_s1 + $0x98] sm:$0xff] }
   0x3   :  { %v33_v5 = vld [vmem:[%s1756_s1] sm:$0xff]  ;;  %v34_v6 = vld [vmem:[%s1756_s1 + $0x8] sm:$0xff]  ;;  %v1008_v7 = vpack.c.bf16 %v82_v4, %v81_v2  ;;  %v83_v14 = vld [vmem:[%s1756_s1 + $0x190] sm:$0xff]  ;;  %v980_v16 = vpack.c.bf16 %v52_v13, %v51_v11 }
   0x4   :  { %v978_v8 = vpack.c.bf16 %v34_v6, %v33_v5  ;;  %v65_v9 = vld [vmem:[%s1756_s1 + $0x100] sm:$0xff]  ;;  %v66_v10 = vld [vmem:[%s1756_s1 + $0x108] sm:$0xff]  ;;  %977 = vmatprep.subr.bf16.mxu0 %v976_v3  ;;  %v84_v15 = vld [vmem:[%s1756_s1 + $0x198] sm:$0xff] }
   0x5   :  { %v1010_v12 = vpack.c.bf16 %v66_v10, %v65_v9  ;;  %1009 = vmatprep.subr.bf16.mxu1 %v1008_v7  ;;  %v1012_v17 = vpack.c.bf16 %v84_v15, %v83_v14  ;;  %v35_v18 = vld [vmem:[%s1756_s1 + $0x10] sm:$0xff]  ;;  %v36_v19 = vld [vmem:[%s1756_s1 + $0x18] sm:$0xff]  ;;  %v53_v23 = vld [vmem:[%s1756_s1 + $0xa0] sm:$0xff] }
   0x6   :  { %979 = vmatpush3.bf16.msra.mxu0 %v978_v8  ;;  %v67_v20 = vld [vmem:[%s1756_s1 + $0x110] sm:$0xff]  ;;  %v982_v21 = vpack.c.bf16 %v36_v19, %v35_v18  ;;  %v68_v22 = vld [vmem:[%s1756_s1 + $0x118] sm:$0xff]  ;;  %v54_v24 = vld [vmem:[%s1756_s1 + $0xa8] sm:$0xff] }
   0x7   :  { %1011 = vmatpush3.bf16.msra.mxu1 %v1010_v12  ;;  %981 = vmatprep.subr.bf16.mxu0 %v980_v16  ;;  %v1014_v25 = vpack.c.bf16 %v68_v22, %v67_v20  ;;  %v984_v26 = vpack.c.bf16 %v54_v24, %v53_v23  ;;  %v85_v27 = vld [vmem:[%s1756_s1 + $0x1a0] sm:$0xff]  ;;  %v86_v28 = vld [vmem:[%s1756_s1 + $0x1a8] sm:$0xff]  ;;  %v55_v35 = vld [vmem:[%s1756_s1 + $0xb0] sm:$0xff] }
   0x8   :  { %1013 = vmatprep.subr.bf16.mxu1 %v1012_v17  ;;  %v37_v29 = vld [vmem:[%s1756_s1 + $0x20] sm:$0xff]  ;;  %v1016_v30 = vpack.c.bf16 %v86_v28, %v85_v27  ;;  %v38_v31 = vld [vmem:[%s1756_s1 + $0x28] sm:$0xff]  ;;  %v56_v36 = vld [vmem:[%s1756_s1 + $0xb8] sm:$0xff] }
   0x9   :  { %v69_v32 = vld [vmem:[%s1756_s1 + $0x120] sm:$0xff]  ;;  %v70_v33 = vld [vmem:[%s1756_s1 + $0x128] sm:$0xff]  ;;  %v986_v34 = vpack.c.bf16 %v38_v31, %v37_v29  ;;  %v87_v37 = vld [vmem:[%s1756_s1 + $0x1b0] sm:$0xff]  ;;  %v988_v39 = vpack.c.bf16 %v56_v36, %v55_v35 }
   0xa   :  { %983 = vmatpush3.bf16.msra.mxu0 %v982_v21  ;;  %v1018_v38 = vpack.c.bf16 %v70_v33, %v69_v32  ;;  %v88_v40 = vld [vmem:[%s1756_s1 + $0x1b8] sm:$0xff]  ;;  %v39_v41 = vld [vmem:[%s1756_s1 + $0x30] sm:$0xff]  ;;  %v57_v46 = vld [vmem:[%s1756_s1 + $0xc0] sm:$0xff] }
   0xb   :  { %1015 = vmatpush3.bf16.msra.mxu1 %v1014_v25  ;;  %985 = vmatprep.subr.bf16.mxu0 %v984_v26  ;;  %v40_v42 = vld [vmem:[%s1756_s1 + $0x38] sm:$0xff]  ;;  %v1020_v43 = vpack.c.bf16 %v88_v40, %v87_v37  ;;  %v71_v44 = vld [vmem:[%s1756_s1 + $0x130] sm:$0xff]  ;;  %v58_v47 = vld [vmem:[%s1756_s1 + $0xc8] sm:$0xff] }
   0xc   :  { %1017 = vmatprep.subr.bf16.mxu1 %v1016_v30  ;;  %v72_v45 = vld [vmem:[%s1756_s1 + $0x138] sm:$0xff]  ;;  %v89_v48 = vld [vmem:[%s1756_s1 + $0x1c0] sm:$0xff]  ;;  %v90_v49 = vld [vmem:[%s1756_s1 + $0x1c8] sm:$0xff]  ;;  %v990_v50 = vpack.c.bf16 %v40_v42, %v39_v41  ;;  %v992_v52 = vpack.c.bf16 %v58_v47, %v57_v46 }
   0xd   :  { %v1022_v51 = vpack.c.bf16 %v72_v45, %v71_v44  ;;  %v41_v53 = vld [vmem:[%s1756_s1 + $0x40] sm:$0xff]  ;;  %v42_v54 = vld [vmem:[%s1756_s1 + $0x48] sm:$0xff]  ;;  %v1024_v56 = vpack.c.bf16 %v90_v49, %v89_v48  ;;  %v59_v58 = vld [vmem:[%s1756_s1 + $0xd0] sm:$0xff] }
   0xe   :  { %987 = vmatpush3.bf16.msra.mxu0 %v986_v34  ;;  %v73_v55 = vld [vmem:[%s1756_s1 + $0x140] sm:$0xff]  ;;  %v74_v57 = vld [vmem:[%s1756_s1 + $0x148] sm:$0xff]  ;;  %v60_v59 = vld [vmem:[%s1756_s1 + $0xd8] sm:$0xff]  ;;  %v994_v62 = vpack.c.bf16 %v42_v54, %v41_v53 }
   0xf   :  { %1019 = vmatpush3.bf16.msra.mxu1 %v1018_v38  ;;  %989 = vmatprep.subr.bf16.mxu0 %v988_v39  ;;  %v91_v60 = vld [vmem:[%s1756_s1 + $0x1d0] sm:$0xff]  ;;  %v92_v61 = vld [vmem:[%s1756_s1 + $0x1d8] sm:$0xff]  ;;  %v1026_v63 = vpack.c.bf16 %v74_v57, %v73_v55  ;;  %v996_v0 = vpack.c.bf16 %v60_v59, %v59_v58  ;;  %v61_v6 = vld [vmem:[%s1756_s1 + $0xe0] sm:$0xff] }
  0x10   :  { %1021 = vmatprep.subr.bf16.mxu1 %v1020_v43  ;;  %v43_v1 = vld [vmem:[%s1756_s1 + $0x50] sm:$0xff]  ;;  %v44_v2 = vld [vmem:[%s1756_s1 + $0x58] sm:$0xff]  ;;  %v1028_v4 = vpack.c.bf16 %v92_v61, %v91_v60  ;;  %v62_v7 = vld [vmem:[%s1756_s1 + $0xe8] sm:$0xff] }
  0x11   :  { %v75_v3 = vld [vmem:[%s1756_s1 + $0x150] sm:$0xff]  ;;  %v76_v5 = vld [vmem:[%s1756_s1 + $0x158] sm:$0xff]  ;;  %v93_v8 = vld [vmem:[%s1756_s1 + $0x1e0] sm:$0xff]  ;;  %v998_v10 = vpack.c.bf16 %v44_v2, %v43_v1  ;;  %v1000_v14 = vpack.c.bf16 %v62_v7, %v61_v6 }
  0x12   :  { %991 = vmatpush3.bf16.msra.mxu0 %v990_v50  ;;  %v94_v9 = vld [vmem:[%s1756_s1 + $0x1e8] sm:$0xff]  ;;  %v45_v11 = vld [vmem:[%s1756_s1 + $0x60] sm:$0xff]  ;;  %v1030_v13 = vpack.c.bf16 %v76_v5, %v75_v3  ;;  %v27_v17 = vld [vmem:[%s1755_s0 + $0x18] sm:$0xff] }
  0x13   :  { %1023 = vmatpush3.bf16.msra.mxu1 %v1022_v51  ;;  %993 = vmatprep.subr.bf16.mxu0 %v992_v52  ;;  %v46_v12 = vld [vmem:[%s1756_s1 + $0x68] sm:$0xff]  ;;  %v77_v15 = vld [vmem:[%s1756_s1 + $0x160] sm:$0xff]  ;;  %v1032_v18 = vpack.c.bf16 %v94_v9, %v93_v8  ;;  %v63_v20 = vld [vmem:[%s1756_s1 + $0xf0] sm:$0xff] }
  0x14   :  { %1025 = vmatprep.subr.bf16.mxu1 %v1024_v56  ;;  %v25_v16 = vld [vmem:[%s1755_s0 + $0x8] sm:$0xff]  ;;  %v64_v21 = vld [vmem:[%s1756_s1 + $0xf8] sm:$0xff]  ;;  %v95_v22 = vld [vmem:[%s1756_s1 + $0x1f0] sm:$0xff]  ;;  %311 = vmatprep.mubr.f32.mxu1 %v27_v17  ;;  %v1002_v24 = vpack.c.bf16 %v46_v12, %v45_v11 }
  0x15   :  { %v78_v19 = vld [vmem:[%s1756_s1 + $0x168] sm:$0xff]  ;;  %241 = vmatprep.mubr.f32.mxu0 %v25_v16  ;;  %v96_v23 = vld [vmem:[%s1756_s1 + $0x1f8] sm:$0xff]  ;;  %v1004_v26 = vpack.c.bf16 %v64_v21, %v63_v20  ;;  %v47_v27 = vld [vmem:[%s1756_s1 + $0x70] sm:$0xff] }
  0x16   :  { %995 = vmatpush3.bf16.msra.mxu0 %v994_v62  ;;  %v1034_v25 = vpack.c.bf16 %v78_v19, %v77_v15  ;;  %v48_v28 = vld [vmem:[%s1756_s1 + $0x78] sm:$0xff]  ;;  %v79_v29 = vld [vmem:[%s1756_s1 + $0x170] sm:$0xff]  ;;  %v1036_v30 = vpack.c.bf16 %v96_v23, %v95_v22  ;;  %v113_v32 = vld [vmem:[%s1756_s1 + $0x280] sm:$0xff] }
  0x17   :  { %1027 = vmatpush3.bf16.msra.mxu1 %v1026_v63  ;;  %997 = vmatprep.subr.bf16.mxu0 %v996_v0  ;;  %v80_v31 = vld [vmem:[%s1756_s1 + $0x178] sm:$0xff]  ;;  %v114_v33 = vld [vmem:[%s1756_s1 + $0x288] sm:$0xff]  ;;  %v145_v34 = vld [vmem:[%s1756_s1 + $0x380] sm:$0xff]  ;;  %v1006_v36 = vpack.c.bf16 %v48_v28, %v47_v27 }
  0x18   :  { %1029 = vmatprep.subr.bf16.mxu1 %v1028_v4  ;;  %v146_v35 = vld [vmem:[%s1756_s1 + $0x388] sm:$0xff]  ;;  %v1038_v37 = vpack.c.bf16 %v80_v31, %v79_v29  ;;  %v1040_v38 = vpack.c.bf16 %v114_v33, %v113_v32  ;;  %v97_v39 = vld [vmem:[%s1756_s1 + $0x200] sm:$0xff]  ;;  %v115_v44 = vld [vmem:[%s1756_s1 + $0x290] sm:$0xff] }
  0x19   :  { %v98_v40 = vld [vmem:[%s1756_s1 + $0x208] sm:$0xff]  ;;  %v129_v41 = vld [vmem:[%s1756_s1 + $0x300] sm:$0xff]  ;;  %v1072_v42 = vpack.c.bf16 %v146_v35, %v145_v34  ;;  %v116_v45 = vld [vmem:[%s1756_s1 + $0x298] sm:$0xff] }
  0x1a   :  { %999 = vmatpush3.bf16.msra.mxu0 %v998_v10  ;;  %v130_v43 = vld [vmem:[%s1756_s1 + $0x308] sm:$0xff]  ;;  %v147_v46 = vld [vmem:[%s1756_s1 + $0x390] sm:$0xff]  ;;  %v148_v47 = vld [vmem:[%s1756_s1 + $0x398] sm:$0xff]  ;;  %v1042_v50 = vpack.c.bf16 %v98_v40, %v97_v39  ;;  %v1044_v52 = vpack.c.bf16 %v116_v45, %v115_v44 }
  0x1b   :  { %1031 = vmatpush3.bf16.msra.mxu1 %v1030_v13  ;;  %1001 = vmatprep.subr.bf16.mxu0 %v1000_v14  ;;  %v24_v48 = vld [vmem:[%s1755_s0] sm:$0xff]  ;;  %v26_v49 = vld [vmem:[%s1755_s0 + $0x10] sm:$0xff]  ;;  %v1074_v51 = vpack.c.bf16 %v130_v43, %v129_v41  ;;  %v100_v54 = vld [vmem:[%s1756_s1 + $0x218] sm:$0xff]  ;;  %v1076_v56 = vpack.c.bf16 %v148_v47, %v147_v46 }
  0x1c   :  { %1033 = vmatprep.subr.bf16.mxu1 %v1032_v18  ;;  %v99_v53 = vld [vmem:[%s1756_s1 + $0x210] sm:$0xff]  ;;  %v132_v57 = vld [vmem:[%s1756_s1 + $0x318] sm:$0xff]  ;;  %v117_v58 = vld [vmem:[%s1756_s1 + $0x2a0] sm:$0xff] }
  0x1d   :  { %v131_v55 = vld [vmem:[%s1756_s1 + $0x310] sm:$0xff]  ;;  %v118_v59 = vld [vmem:[%s1756_s1 + $0x2a8] sm:$0xff]  ;;  %v149_v60 = vld [vmem:[%s1756_s1 + $0x3a0] sm:$0xff]  ;;  %v1046_v62 = vpack.c.bf16 %v100_v54, %v99_v53 }
  0x1e   :  { %1003 = vmatpush3.bf16.msra.mxu0 %v1002_v24  ;;  %v150_v61 = vld [vmem:[%s1756_s1 + $0x3a8] sm:$0xff]  ;;  %v1078_v63 = vpack.c.bf16 %v132_v57, %v131_v55  ;;  %v1048_v0 = vpack.c.bf16 %v118_v59, %v117_v58  ;;  %v101_v1 = vld [vmem:[%s1756_s1 + $0x220] sm:$0xff]  ;;  %v119_v6 = vld [vmem:[%s1756_s1 + $0x2b0] sm:$0xff] }
  0x1f   :  { %1035 = vmatpush3.bf16.msra.mxu1 %v1034_v25  ;;  %1005 = vmatprep.subr.bf16.mxu0 %v1004_v26  ;;  %v102_v2 = vld [vmem:[%s1756_s1 + $0x228] sm:$0xff]  ;;  %v133_v3 = vld [vmem:[%s1756_s1 + $0x320] sm:$0xff]  ;;  %v1080_v4 = vpack.c.bf16 %v150_v61, %v149_v60  ;;  %v120_v7 = vld [vmem:[%s1756_s1 + $0x2b8] sm:$0xff] }
  0x20   :  { %1037 = vmatprep.subr.bf16.mxu1 %v1036_v30  ;;  %v134_v5 = vld [vmem:[%s1756_s1 + $0x328] sm:$0xff]  ;;  %v151_v8 = vld [vmem:[%s1756_s1 + $0x3b0] sm:$0xff]  ;;  %v152_v9 = vld [vmem:[%s1756_s1 + $0x3b8] sm:$0xff]  ;;  %v1050_v10 = vpack.c.bf16 %v102_v2, %v101_v1  ;;  %v1052_v12 = vpack.c.bf16 %v120_v7, %v119_v6 }
  0x21   :  { %v1082_v11 = vpack.c.bf16 %v134_v5, %v133_v3  ;;  %v103_v13 = vld [vmem:[%s1756_s1 + $0x230] sm:$0xff]  ;;  %v104_v14 = vld [vmem:[%s1756_s1 + $0x238] sm:$0xff]  ;;  %v1084_v16 = vpack.c.bf16 %v152_v9, %v151_v8  ;;  %v121_v18 = vld [vmem:[%s1756_s1 + $0x2c0] sm:$0xff] }
  0x22   :  { %1007 = vmatpush3.bf16.msra.mxu0 %v1006_v36  ;;  %v135_v15 = vld [vmem:[%s1756_s1 + $0x330] sm:$0xff]  ;;  %v136_v17 = vld [vmem:[%s1756_s1 + $0x338] sm:$0xff]  ;;  %v122_v19 = vld [vmem:[%s1756_s1 + $0x2c8] sm:$0xff]  ;;  %v1054_v23 = vpack.c.bf16 %v104_v14, %v103_v13 }
  0x23   :  { %1039 = vmatpush3.bf16.msra.mxu1 %v1038_v37  ;;  %1041 = vmatprep.subr.bf16.mxu0 %v1040_v38  ;;  %v153_v20 = vld [vmem:[%s1756_s1 + $0x3c0] sm:$0xff]  ;;  %v154_v21 = vld [vmem:[%s1756_s1 + $0x3c8] sm:$0xff]  ;;  %v31_v24 = vld [vmem:[%s1755_s0 + $0x38] sm:$0xff]  ;;  %v1086_v25 = vpack.c.bf16 %v136_v17, %v135_v15  ;;  %v1056_v26 = vpack.c.bf16 %v122_v19, %v121_v18 }
  0x24   :  { %1073 = vmatprep.subr.bf16.mxu1 %v1072_v42  ;;  %v29_v22 = vld [vmem:[%s1755_s0 + $0x28] sm:$0xff]  ;;  %v105_v27 = vld [vmem:[%s1756_s1 + $0x240] sm:$0xff]  ;;  %v1088_v30 = vpack.c.bf16 %v154_v21, %v153_v20  ;;  %v123_v32 = vld [vmem:[%s1756_s1 + $0x2d0] sm:$0xff] }
  0x25   :  { %242 = vmatmul.mubr.f32.vlgmr.msra.gmra.mrb[0].mxu0 %v24_v48  ;;  %v106_v28 = vld [vmem:[%s1756_s1 + $0x248] sm:$0xff]  ;;  %v137_v29 = vld [vmem:[%s1756_s1 + $0x340] sm:$0xff]  ;;  %v124_v33 = vld [vmem:[%s1756_s1 + $0x2d8] sm:$0xff] }
  0x26   :  { %312 = vmatmul.mubr.f32.vlgmr.msra.gmra.mrb[0].mxu1 %v26_v49  ;;  %1043 = vmatpush3.bf16.msra.mxu0 %v1042_v50  ;;  %v138_v31 = vld [vmem:[%s1756_s1 + $0x348] sm:$0xff]  ;;  %v155_v34 = vld [vmem:[%s1756_s1 + $0x3d0] sm:$0xff]  ;;  %v156_v35 = vld [vmem:[%s1756_s1 + $0x3d8] sm:$0xff]  ;;  %v1058_v36 = vpack.c.bf16 %v106_v28, %v105_v27  ;;  %v1060_v38 = vpack.c.bf16 %v124_v33, %v123_v32 }
  0x27   :  { %1075 = vmatpush3.bf16.msra.mxu1 %v1074_v51  ;;  %1045 = vmatprep.subr.bf16.mxu0 %v1044_v52  ;;  %v1090_v37 = vpack.c.bf16 %v138_v31, %v137_v29  ;;  %v107_v39 = vld [vmem:[%s1756_s1 + $0x250] sm:$0xff]  ;;  %v108_v40 = vld [vmem:[%s1756_s1 + $0x258] sm:$0xff]  ;;  %v1092_v42 = vpack.c.bf16 %v156_v35, %v155_v34  ;;  %v125_v44 = vld [vmem:[%s1756_s1 + $0x2e0] sm:$0xff] }
  0x28   :  { %1077 = vmatprep.subr.bf16.mxu1 %v1076_v56  ;;  %381 = vmatprep.mubr.f32.mxu0 %v29_v22  ;;  %v139_v41 = vld [vmem:[%s1756_s1 + $0x350] sm:$0xff]  ;;  %v140_v43 = vld [vmem:[%s1756_s1 + $0x358] sm:$0xff]  ;;  %v126_v45 = vld [vmem:[%s1756_s1 + $0x2e8] sm:$0xff] }
  0x29   :  { %451 = vmatprep.mubr.f32.mxu1 %v31_v24  ;;  %v157_v46 = vld [vmem:[%s1756_s1 + $0x3e0] sm:$0xff]  ;;  %v158_v47 = vld [vmem:[%s1756_s1 + $0x3e8] sm:$0xff] }
  0x2a   :  { %1047 = vmatpush3.bf16.msra.mxu0 %v1046_v62 }
  0x2b   :  { %1079 = vmatpush3.bf16.msra.mxu1 %v1078_v63  ;;  %1049 = vmatprep.subr.bf16.mxu0 %v1048_v0 }
  0x2c   :  { %1081 = vmatprep.subr.bf16.mxu1 %v1080_v4 }
  0x2e   :  { %1051 = vmatpush3.bf16.msra.mxu0 %v1050_v10 }
  0x2f   :  { %1083 = vmatpush3.bf16.msra.mxu1 %v1082_v11  ;;  %1053 = vmatprep.subr.bf16.mxu0 %v1052_v12 }
  0x30   :  { %1085 = vmatprep.subr.bf16.mxu1 %v1084_v16 }
  0x32   :  { %1055 = vmatpush3.bf16.msra.mxu0 %v1054_v23 }
  0x33   :  { %1087 = vmatpush3.bf16.msra.mxu1 %v1086_v25  ;;  %1057 = vmatprep.subr.bf16.mxu0 %v1056_v26 }
  0x34   :  { %1089 = vmatprep.subr.bf16.mxu1 %v1088_v30 }
  0x35   :  { %11 = vsyncpa [#allocation3], 0  ;;  %v1062_v48 = vpack.c.bf16 %v108_v40, %v107_v39  ;;  %v1094_v49 = vpack.c.bf16 %v140_v43, %v139_v41  ;;  %v1064_v50 = vpack.c.bf16 %v126_v45, %v125_v44  ;;  %v109_v51 = vld [vmem:[%s1756_s1 + $0x260] sm:$0xff]  ;;  %v110_v52 = vld [vmem:[%s1756_s1 + $0x268] sm:$0xff]  ;;  %v1096_v54 = vpack.c.bf16 %v158_v47, %v157_v46  ;;  %s1183_s15 = smov [#allocation2]  }
  0x36   :  { %1059 = vmatpush3.bf16.msra.mxu0 %v1058_v36  ;;  %v141_v53 = vld [vmem:[%s1756_s1 + $0x360] sm:$0xff]  ;;  %v142_v55 = vld [vmem:[%s1756_s1 + $0x368] sm:$0xff]  ;;  %v127_v56 = vld [vmem:[%s1756_s1 + $0x2f0] sm:$0xff]  ;;  %v1066_v60 = vpack.c.bf16 %v110_v52, %v109_v51  ;;  %v1180_v10 = vmov 0.0|0.0   ;;  %vm1181_vm0 = vmmov 0   ;;  %v1182_v17 = vmov 0.0  }
  0x37   :  { %1091 = vmatpush3.bf16.msra.mxu1 %v1090_v37  ;;  %1061 = vmatprep.subr.bf16.mxu0 %v1060_v38  ;;  %v128_v57 = vld [vmem:[%s1756_s1 + $0x2f8] sm:$0xff]  ;;  %v159_v58 = vld [vmem:[%s1756_s1 + $0x3f0] sm:$0xff]  ;;  %v1098_v61 = vpack.c.bf16 %v142_v55, %v141_v53  ;;  %v161_v6 = vld [vmem:[%s1756_s1 + $0x400] sm:$0xff]  ;;  %vm539_vm1 = vcmask 261120   ;;  %vm618_vm2 = vcmask 523264   ;;  %s728_s16 = sshll.u32 %s1183_s15, 4  ;;  %s729_s16 = int_to_ptr.vmem [resolvable:$true] %s728_s16 }
  0x38   :  { %1093 = vmatprep.subr.bf16.mxu1 %v1092_v42  ;;  %v160_v59 = vld [vmem:[%s1756_s1 + $0x3f8] sm:$0xff]  ;;  %v1068_v62 = vpack.c.bf16 %v128_v57, %v127_v56  ;;  %v111_v63 = vld [vmem:[%s1756_s1 + $0x270] sm:$0xff]  ;;  %v162_v7 = vld [vmem:[%s1756_s1 + $0x408] sm:$0xff]  ;;  %p1161_p1 = scmp.lt.s32.totalorder %s729_s16, %s729_s16 }
  0x39   :  { %v112_v0 = vld [vmem:[%s1756_s1 + $0x278] sm:$0xff]  ;;  %v1100_v1 = vpack.c.bf16 %v160_v59, %v159_v58  ;;  %v143_v2 = vld [vmem:[%s1756_s1 + $0x370] sm:$0xff]  ;;  %v28_v8 = vld [vmem:[%s1755_s0 + $0x20] sm:$0xff]  ;;  %v1105_v9 = vpack.c.bf16 %v162_v7, %v161_v6 }
  0x3a   :  { %1063 = vmatpush3.bf16.msra.mxu0 %v1062_v48  ;;  %v144_v3 = vld [vmem:[%s1756_s1 + $0x378] sm:$0xff]  ;;  %v1070_v4 = vpack.c.bf16 %v112_v0, %v111_v63  ;;  %v30_v11 = vld [vmem:[%s1755_s0 + $0x30] sm:$0xff]  ;;  %v165_v15 = vld [vmem:[%s1756_s1 + $0x420] sm:$0xff] }
  0x3b   :  { %1095 = vmatpush3.bf16.msra.mxu1 %v1094_v49  ;;  %1065 = vmatprep.subr.bf16.mxu0 %v1064_v50  ;;  %v1102_v5 = vpack.c.bf16 %v144_v3, %v143_v2  ;;  %v163_v12 = vld [vmem:[%s1756_s1 + $0x410] sm:$0xff]  ;;  %v164_v13 = vld [vmem:[%s1756_s1 + $0x418] sm:$0xff]  ;;  %v166_v16 = vld [vmem:[%s1756_s1 + $0x428] sm:$0xff] }
  0x3c   :  { %1097 = vmatprep.subr.bf16.mxu1 %v1096_v54  ;;  %v1108_v14 = vpack.c.bf16 %v164_v13, %v163_v12  ;;  %v1111_v18 = vpack.c.bf16 %v166_v16, %v165_v15  ;;  %v167_v19 = vld [vmem:[%s1756_s1 + $0x430] sm:$0xff]  ;;  %v168_v20 = vld [vmem:[%s1756_s1 + $0x438] sm:$0xff]  ;;  %v169_v22 = vld [vmem:[%s1756_s1 + $0x440] sm:$0xff] }
  0x3d   :  { %v1114_v21 = vpack.c.bf16 %v168_v20, %v167_v19  ;;  %v170_v23 = vld [vmem:[%s1756_s1 + $0x448] sm:$0xff]  ;;  %v171_v25 = vld [vmem:[%s1756_s1 + $0x450] sm:$0xff]  ;;  %v172_v26 = vld [vmem:[%s1756_s1 + $0x458] sm:$0xff] }
  0x3e   :  { %1067 = vmatpush3.bf16.msra.mxu0 %v1066_v60  ;;  %v1117_v24 = vpack.c.bf16 %v170_v23, %v169_v22  ;;  %v1120_v27 = vpack.c.bf16 %v172_v26, %v171_v25  ;;  %v173_v28 = vld [vmem:[%s1756_s1 + $0x460] sm:$0xff]  ;;  %v174_v29 = vld [vmem:[%s1756_s1 + $0x468] sm:$0xff]  ;;  %v175_v31 = vld [vmem:[%s1756_s1 + $0x470] sm:$0xff] }
  0x3f   :  { %1099 = vmatpush3.bf16.msra.mxu1 %v1098_v61  ;;  %1069 = vmatprep.subr.bf16.mxu0 %v1068_v62  ;;  %v1123_v30 = vpack.c.bf16 %v174_v29, %v173_v28  ;;  %v176_v32 = vld [vmem:[%s1756_s1 + $0x478] sm:$0xff]  ;;  %v32_v34 = vld [vmem:[%s1755_s0 + $0x40] sm:$0xff]  ;;  %v529_v36 = vld [vmem:[%s1757_s2 + $0x8] sm:$0xff] }
  0x40   :  { %1101 = vmatprep.subr.bf16.mxu1 %v1100_v1  ;;  %v1126_v33 = vpack.c.bf16 %v176_v32, %v175_v31  ;;  %v528_v35 = vld [vmem:[%s1757_s2] sm:$0xff]  ;;  %v530_v37 = vld [vmem:[%s1757_s2 + $0x10] sm:$0xff]  ;;  %v531_v39 = vld [vmem:[%s1757_s2 + $0x18] sm:$0xff] }
  0x41   :  { %v1129_v38 = vpack.c.bf16 %v529_v36, %v528_v35  ;;  %v1132_v40 = vpack.c.bf16 %v531_v39, %v530_v37  ;;  %v736_v60 = vld [vmem:[%s1758_s3] ss:$0 sm:$0xff]  ;;  %v634_v13 = vld [vmem:[%s1759_s4 + $0x8] sm:$0xff]  ;;  %v635_v15 = vld [vmem:[%s1759_s4 + $0x10] sm:$0xff] }
  0x42   :  { %1071 = vmatpush3.bf16.msra.mxu0 %v1070_v4  ;;  %v633_v12 = vld [vmem:[%s1759_s4] sm:$0xff]  ;;  %v636_v16 = vld [vmem:[%s1759_s4 + $0x18] sm:$0xff]  ;;  %v638_v19 = vld [vmem:[%s1759_s4 + $0x28] sm:$0xff] }
  0x43   :  { %1103 = vmatpush3.bf16.msra.mxu1 %v1102_v5  ;;  %1104 = vmatprep.subr.bf16.mxu0 %v1180_v10  ;;  %v640_v22 = vld [vmem:[%s1759_s4 + $0x38] sm:$0xff] }
  0x44   :  { %1128 = vmatprep.subr.bf16.mxu1 %v1180_v10 }
  0x45   :  { %382 = vmatmul.mubr.f32.vlgmr.msra.gmra.mrb[2].mxu0 %v28_v8 }
  0x46   :  { %1106 = vmatpush3.bf16.msra.mxu0 %v1105_v9  ;;  %452 = vmatmul.mubr.f32.vlgmr.msra.gmra.mrb[2].mxu1 %v30_v11 }
  0x47   :  { %1107 = vmatprep.subr.bf16.mxu0 %v1180_v10  ;;  %943 = vmatprep.mubr.msk.f32.mxu0 %vm1181_vm0, %v1182_v17 }
  0x48   :  { %954 = vmatprep.mubr.msk.f32.mxu1 %vm1181_vm0, %v1182_v17  ;;  %1130 = vmatpush3.bf16.msra.mxu1 %v1129_v38 }
  0x49   :  { %1131 = vmatprep.subr.bf16.mxu1 %v1180_v10 }
  0x4a   :  { %1109 = vmatpush3.bf16.msra.mxu0 %v1108_v14  ;;  %v1135_v14 = vpack.c.bf16 %v634_v13, %v633_v12 }
  0x4b   :  { %1110 = vmatprep.subr.bf16.mxu0 %v1180_v10 }
  0x4c   :  { %1133 = vmatpush3.bf16.msra.mxu1 %v1132_v40 }
  0x4d   :  { %1134 = vmatprep.subr.bf16.mxu1 %v1180_v10 }
  0x4e   :  { %1112 = vmatpush3.bf16.msra.mxu0 %v1111_v18  ;;  %v637_v18 = vld [vmem:[%s1759_s4 + $0x20] sm:$0xff] }
  0x4f   :  { %1113 = vmatprep.subr.bf16.mxu0 %v1180_v10  ;;  %v1141_v20 = vpack.c.bf16 %v638_v19, %v637_v18 }
  0x52   :  { %1115 = vmatpush3.bf16.msra.mxu0 %v1114_v21  ;;  %v639_v21 = vld [vmem:[%s1759_s4 + $0x30] sm:$0xff]  ;;  %s1156_s4 = scalar_lea.vmem %s729_s16, 128 }
  0x53   :  { %1116 = vmatprep.subr.bf16.mxu0 %v1180_v10  ;;  %v1144_v23 = vpack.c.bf16 %v640_v22, %v639_v21  ;;  %p1157_p0 = scmp.ne.s32.totalorder %s729_s16, %s1156_s4  ;;  %p1162_p2 = scmp.lt.s32.totalorder %s1156_s4, %s1156_s4 }
  0x55   :  { %p1163_p3 = por %p1162_p2, %p1161_p1 }
  0x56   :  { %1118 = vmatpush3.bf16.msra.mxu0 %v1117_v24 }
  0x57   :  { %1119 = vmatprep.subr.bf16.mxu0 %v1180_v10  ;;  %p1164_p4 = pnand %p1163_p3, %p1157_p0 }
  0x5a   :  { %1121 = vmatpush3.bf16.msra.mxu0 %v1120_v27 }
  0x5b   :  { %1122 = vmatprep.subr.bf16.mxu0 %v1180_v10 }
  0x5e   :  { %1124 = vmatpush3.bf16.msra.mxu0 %v1123_v30 }
  0x5f   :  { %1125 = vmatprep.subr.bf16.mxu0 %v1180_v10 }
  0x62   :  { %1127 = vmatpush3.bf16.msra.mxu0 %v1126_v33 }
  0x65   :  { %944 = vmatmul.mubr.f32.vlgmr.msra.gmra.mrb[4].mxu0 %v32_v34 }
  0xf8   :  { %v772_v41 = vpop.f32.mrb[0].mxu0 }
  0xf9   :  { %v807_v42 = vpop.f32.mrb[0].mxu1  ;;  %v773_v43 = vpop.f32.mrb[1].mxu0 }
  0xfa   :  { %v774_v44 = vadd.f32 %v773_v43, %v772_v41  ;;  %v808_v45 = vpop.f32.mrb[1].mxu1 }
  0xfb   :  { %v809_v46 = vadd.f32 %v808_v45, %v807_v42 }
  0xfd   :  { %v314_v47 = vadd.f32 %v809_v46, %v774_v44 }
 0x118   :  { %v842_v48 = vpop.f32.mrb[2].mxu0 }
 0x119   :  { %v843_v49 = vpop.f32.mrb[3].mxu0  ;;  %v877_v50 = vpop.f32.mrb[2].mxu1 }
 0x11a   :  { %v844_v51 = vadd.f32 %v843_v49, %v842_v48  ;;  %v878_v52 = vpop.f32.mrb[3].mxu1 }
 0x11b   :  { %v879_v53 = vadd.f32 %v878_v52, %v877_v50 }
 0x11c   :  { %v384_v54 = vadd.f32 %v844_v51, %v314_v47 }
 0x11e   :  { %v454_v55 = vadd.f32 %v879_v53, %v384_v54 }
 0x138   :  { %v523_v56 = vpop.f32.mrb[4].mxu0 }
 0x139   :  { %v524_v57 = vadd.f32 %v523_v56, %v454_v55  ;;  %v945_v58 = vpop.f32.mrb[5].mxu0 }
 0x13b   :  { %1150 = vtanh.f32 %v524_v57 }
 0x145   :  { %v1151_v59 = vpop.eup %1150 }
 0x146   :  { %955 = vmatmul.mubr.msk.f32.vlgmr.msra.gmra.mrb[4].mxu1 %vm539_vm1, %v1151_v59 }
 0x147   :  { %973 = vmatprep.mubr.msk.f32.mxu1 %vm1181_vm0, %v1182_v17  ;;  %1136 = vmatpush3.bf16.msra.mxu1 %v1135_v14  ;;  %v1138_v17 = vpack.c.bf16 %v636_v16, %v635_v15 }
 0x148   :  { %1137 = vmatprep.subr.bf16.mxu1 %v1180_v10 }
 0x14b   :  { %1139 = vmatpush3.bf16.msra.mxu1 %v1138_v17 }
 0x14c   :  { %1140 = vmatprep.subr.bf16.mxu1 %v1180_v10 }
 0x14f   :  { %1142 = vmatpush3.bf16.msra.mxu1 %v1141_v20 }
 0x150   :  { %1143 = vmatprep.subr.bf16.mxu1 %v1180_v10  ;;  %v738_v10 = vld [vmem:[%s1760_s5] ss:$0 sm:$0xff] }
 0x153   :  { %1145 = vmatpush3.bf16.msra.mxu1 %v1144_v23 }
 0x219   :  { %v609_v61 = vpop.f32.mrb[4].mxu1 }
 0x21a   :  { %v610_v62 = vadd.f32 %v736_v60, %v609_v61  ;;  %v956_v63 = vpop.f32.mrb[5].mxu1 }
 0x21c   :  { %v614_v0 = vmul.f32 0.70710677, %v610_v62  ;;  %v613_v2 = vmul.f32 0.5, %v610_v62 }
 0x21e   :  { %1152 = verf.f32 %v614_v0 }
 0x228   :  { %v1153_v1 = vpop.eup %1152 }
 0x229   :  { %v616_v3 = vadd.f32 1.0, %v1153_v1 }
 0x22b   :  { %v617_v4 = vmul.f32 %v616_v3, %v613_v2 }
 0x22d   :  { %v619_v5 = vsel %vm618_vm2, %v617_v4, 0.0 }
 0x22e   :  { %620 = vadd.xlane.f32.xlu0 %v619_v5 }
 0x2bb   :  { %v621_v6 = vpop.xlane.xlu0 %620 }
 0x2bc   :  { %v623_v7 = vmul.f32 0.015625, %v621_v6 }
 0x2be   :  { %v624_v8 = vsub.f32 %v617_v4, %v623_v7 }
 0x2c0   :  { %v625_v9 = vmul.f32 %v624_v8, %v624_v8 }
 0x2c2   :  { %v626_v11 = vsel %vm618_vm2, %v625_v9, 0.0 }
 0x2c3   :  { %627 = vadd.xlane.f32.xlu0 %v626_v11 }
 0x350   :  { %v628_v24 = vpop.xlane.xlu0 %627 }
 0x351   :  { %v629_v25 = vmul.f32 0.015625, %v628_v24 }
 0x353   :  { %v630_v26 = vadd.f32 1e-05, %v629_v25 }
 0x355   :  { %1154 = vrsqrt.f32 %v630_v26 }
 0x35f   :  { %v1155_v27 = vpop.eup %1154 }
 0x360   :  { %v632_v28 = vmul.f32 %v1155_v27, %v624_v8 }
 0x362   :  { %974 = vmatmul.mubr.msk.f32.vlgmr.msra.gmra.mrb[6].mxu1 %vm618_vm2, %v632_v28 }
 0x435   :  { %v717_v29 = vpop.f32.mrb[6].mxu1 }
 0x436   :  { %v718_v30 = vadd.f32 %v738_v10, %v717_v29  ;;  %v975_v31 = vpop.f32.mrb[7].mxu1 }
 0x438   :  { %721 = vst [vmem:[#allocation2] sm:$0xff] %v718_v30 }
 0x439   :  { %1167 = shalt.err (!%p1164_p4)
}
 0x43a   :  { %s1168_s19 = scalar_lea.hbm %s1761_s6, 128 }
 0x43b   :  { %p1169_p5 = scmp.ne.s32.totalorder %s1761_s6, %s1168_s19  ;;  %p1172_p6 = scmp.lt.u32.totalorder %s1168_s19, %s1761_s6 }
 0x43d   :  { %p1174_p7 = pnand %p1172_p6, %p1169_p5 }
 0x43f   :  { %1177 = shalt.err (!%p1174_p7)
}
 0x440   :  { %731 = dma.vmem_to_hbm [thread:$0]  %s729_s16, 128, %s1761_s6, [#allocation3]  }
 0x441   :  { %1178 = dma.done.wait [#allocation3], 128  }
 0x442   :  { %1179 = vsyncadd [#allocation3], 4294967168 }
 0x443   :  { %735 = vsyncpa [#allocation3], 1 }

</bundles_post_ra>
